<compile_context>
chip_gen: v7x
topology: tpu7x:2x2x1
jax: 0.10.0
libtpu: 0.0.40
codegen_flags: <defaults>
</compile_context>

<pallas_src>
import functools

import jax
import jax.numpy as jnp
from jax.experimental import pallas as pl
from jax.experimental.pallas import tpu as pltpu

LANE = 128


def _round_up(x, m):
    return (x + m - 1) // m * m


def _gin_fused_kernel(a_ref, h0_ref, w_ref, b_ref, o_ref, hbuf0, hbuf1,
                      *, num_layers, tm):
    l = pl.program_id(0)   # layer index (outer, sequential)
    i = pl.program_id(1)   # row-tile index (inner, sequential)

    row0 = pl.multiple_of(i * tm, tm)
    is_hidden = l < num_layers - 1   # ReLU + scratch store for all but the last layer

    def layer_step(src_ref, dst_ref):
        # GINConv (eps=0, sum aggregation): rows [row0, row0+tm) of (I + A) @ h.
        agg = jnp.dot(a_ref[...], src_ref[...],
                      preferred_element_type=jnp.float32)          # (tm, f) f32
        # Linear: agg @ W[l] + b[l]  (bf16 MXU operands, f32 accumulation).
        y = jnp.dot(agg.astype(w_ref.dtype), w_ref[...],
                    preferred_element_type=jnp.float32) + b_ref[...]

        # Hidden layers: ReLU (dropout p=0.0 is the identity) and stash the
        # activations for the next layer in the ping-pong VMEM scratch.
        # TODO(synk): nonzero dropout would need pltpu.prng_seed/prng_random_bits.
        @pl.when(is_hidden)
        def _():
            dst_ref[pl.ds(row0, tm), :] = jnp.maximum(y, 0.0).astype(dst_ref.dtype)

        # Last layer: write the logits tile straight to the HBM-backed output.
        @pl.when(jnp.logical_not(is_hidden))
        def _():
            o_ref[...] = y.astype(o_ref.dtype)

    # Layer 0 reads the resident padded input features directly; later layers
    # ping-pong between the two VMEM scratch buffers:
    #   layer 0      : h0    -> hbuf0
    #   layer 1,3,...: hbuf0 -> hbuf1
    #   layer 2,4,...: hbuf1 -> hbuf0
    @pl.when(l == 0)
    def _():
        layer_step(h0_ref, hbuf0)

    @pl.when(l % 2 == 1)
    def _():
        layer_step(hbuf0, hbuf1)

    @pl.when(jnp.logical_and(l > 0, l % 2 == 0))
    def _():
        layer_step(hbuf1, hbuf0)


def init_params(key, in_feats, h_feats, num_layer, num_classes):
    """nn.Linear-style params; W stored as (F_in, F_out) (PyTorch W^T)."""
    dims = [in_feats] + [h_feats] * (num_layer - 1) + [num_classes]
    params = []
    for i in range(len(dims) - 1):
        f_in, f_out = dims[i], dims[i + 1]
        key, kw, kb = jax.random.split(key, 3)
        bound = 1.0 / jnp.sqrt(jnp.float32(f_in))
        w = jax.random.uniform(kw, (f_in, f_out), jnp.float32, -bound, bound)
        b = jax.random.uniform(kb, (f_out,), jnp.float32, -bound, bound)
        params.append((w, b))
    return params


def gin_forward(a_hat, x, params):
    """Fused GIN forward.  a_hat = I + A (dense, 0/1 valued), x = (N, in_feats)."""
    n = x.shape[0]
    num_layers = len(params)
    c_out = params[-1][0].shape[1]

    # Pad every feature dim to a lane-dense multiple of 128 (zero padding: exact).
    max_feat = max([x.shape[1]] + [w.shape[0] for w, _ in params]
                   + [w.shape[1] for w, _ in params])
    f = max(LANE, _round_up(max_feat, LANE))

    # Row tile: multiple of 32 (bf16 sublane packing), capped at 256.
    tm = 256 if n >= 256 else _round_up(n, 32)
    n_pad = _round_up(n, tm)
    n_tiles = n_pad // tm

    # Pad + cast inputs (bf16 is exact for the 0/1 adjacency).
    a_p = jnp.zeros((n_pad, n_pad), jnp.bfloat16).at[:n, :n].set(
        a_hat.astype(jnp.bfloat16))
    h_p = jnp.zeros((n_pad, f), jnp.bfloat16).at[:n, :x.shape[1]].set(
        x.astype(jnp.bfloat16))
    w_stack = jnp.zeros((num_layers, f, f), jnp.bfloat16)
    b_stack = jnp.zeros((num_layers, 1, f), jnp.float32)
    for li, (w, b) in enumerate(params):
        w_stack = w_stack.at[li, :w.shape[0], :w.shape[1]].set(w.astype(jnp.bfloat16))
        b_stack = b_stack.at[li, 0, :b.shape[0]].set(b.astype(jnp.float32))

    # Advisory cost estimate.
    flops = int(num_layers * (2 * n_pad * n_pad * f + 2 * n_pad * f * f))
    bytes_accessed = int(num_layers * n_pad * n_pad * 2    # a_hat stripes, per layer
                         + n_pad * f * 2                   # h0 (resident, once)
                         + num_layers * (f * f * 2 + f * 4)  # W, b
                         + n_pad * f * 4)                  # output
    # VMEM budget: double-buffered inputs/outputs + two full-h scratch buffers.
    vmem_est = (2 * tm * n_pad * 2 + 2 * n_pad * f * 2 + 2 * f * f * 2
                + 2 * f * 4 + 2 * tm * f * 4 + 2 * n_pad * f * 2)
    vmem_limit = int(min(max(2 * vmem_est, 16 * 2**20), 32 * 2**20))

    kernel = functools.partial(_gin_fused_kernel, num_layers=num_layers, tm=tm)

    out = pl.pallas_call(
        kernel,
        out_shape=jax.ShapeDtypeStruct((n_pad, f), jnp.float32),
        grid_spec=pltpu.PrefetchScalarGridSpec(
            num_scalar_prefetch=0,
            grid=(num_layers, n_tiles),
            in_specs=[
                pl.BlockSpec((tm, n_pad), lambda l, i: (i, 0)),      # a_hat row stripe
                pl.BlockSpec((n_pad, f), lambda l, i: (0, 0)),       # h0 (resident)
                pl.BlockSpec((None, f, f), lambda l, i: (l, 0, 0)),  # W[l]
                pl.BlockSpec((None, 1, f), lambda l, i: (l, 0, 0)),  # b[l]
            ],
            out_specs=pl.BlockSpec((tm, f), lambda l, i: (i, 0)),
            scratch_shapes=[
                pltpu.VMEM((n_pad, f), jnp.bfloat16),   # ping-pong h buffers
                pltpu.VMEM((n_pad, f), jnp.bfloat16),
            ],
        ),
        compiler_params=pltpu.CompilerParams(
            dimension_semantics=("arbitrary", "arbitrary"),
            vmem_limit_bytes=vmem_limit,
        ),
        cost_estimate=pl.CostEstimate(
            flops=flops, transcendentals=0, bytes_accessed=bytes_accessed),
    )(a_p, h_p, w_stack, b_stack)

    return out[:n, :c_out]


if __name__ == "__main__":
    key = jax.random.PRNGKey(0)
    k_graph, k_feat, k_param = jax.random.split(key, 3)

    # Small synthetic graph / features, consistent with the PyTorch module.
    N = 64
    IN_FEATS = 16
    H_FEATS = 32
    NUM_LAYER = 3
    NUM_CLASSES = 8

    # Random directed adjacency (no self loops), density ~0.1; a_hat = I + A.
    adj = (jax.random.uniform(k_graph, (N, N)) < 0.1).astype(jnp.float32)
    adj = adj * (1.0 - jnp.eye(N, dtype=jnp.float32))
    a_hat = adj + jnp.eye(N, dtype=jnp.float32)

    x = jax.random.normal(k_feat, (N, IN_FEATS), jnp.float32)
    params = init_params(k_param, IN_FEATS, H_FEATS, NUM_LAYER, NUM_CLASSES)

    fwd = jax.jit(gin_forward)
    out = jax.block_until_ready(fwd(a_hat, x, params))
    assert out.shape == (N, NUM_CLASSES), out.shape
    assert jnp.all(jnp.isfinite(out))

    # f32 reference; loose tolerance because kernel inputs are bf16 (f32 accum).
    ref = x
    for li, (w, b) in enumerate(params):
        ref = (a_hat @ ref) @ w + b
        if li < len(params) - 1:
            ref = jnp.maximum(ref, 0.0)
    tol = 0.05 * (float(jnp.max(jnp.abs(ref))) + 1.0)
    max_err = float(jnp.max(jnp.abs(out - ref)))
    assert max_err <= tol, (max_err, tol)

    print("KERNEL_OK")
</pallas_src>

<mosaic_0001>
module attributes {stable_mosaic.version = 11 : i64} {
  func.func @_gin_fused_kernel(%arg0: i32, %arg1: i32, %arg2: memref<64x64xbf16, #tpu.memory_space<vmem>>, %arg3: memref<64x128xbf16, #tpu.memory_space<vmem>>, %arg4: memref<1x128x128xbf16, #tpu.memory_space<vmem>>, %arg5: memref<1x1x128xf32, #tpu.memory_space<vmem>>, %arg6: memref<64x128xf32, #tpu.memory_space<vmem>>, %arg7: memref<64x128xbf16, #tpu.memory_space<vmem>>, %arg8: memref<64x128xbf16, #tpu.memory_space<vmem>>) attributes {dimension_semantics = [#tpu.dimension_semantics<arbitrary>, #tpu.dimension_semantics<arbitrary>], iteration_bounds = array<i64: 3, 1>, scalar_prefetch = 0 : i64, scratch_operands = 2 : i64, tpu.core_type = #tpu.core_type<tc>, window_params = [{transform_indices = @transform_0, window_bounds = array<i64: 64, 64>}, {pipeline_mode = #tpu.pipeline_mode<synchronous>, transform_indices = @transform_1, window_bounds = array<i64: 64, 128>}, {transform_indices = @transform_2, window_bounds = array<i64: 1, 128, 128>}, {transform_indices = @transform_3, window_bounds = array<i64: 1, 1, 128>}, {transform_indices = @transform_4, window_bounds = array<i64: 64, 128>}]} {
    %c64_i32 = arith.constant 64 : i32
    %0 = arith.muli %arg1, %c64_i32 : i32
    %1 = tpu.assume_multiple %0, 64 : i32
    %c2_i32 = arith.constant 2 : i32
    %2 = arith.cmpi slt, %arg0, %c2_i32 : i32
    %c0_i32 = arith.constant 0 : i32
    %3 = arith.cmpi eq, %arg0, %c0_i32 : i32
    %4 = arith.extui %3 : i1 to i32
    %c0_i32_0 = arith.constant 0 : i32
    %5 = arith.cmpi ne, %4, %c0_i32_0 : i32
    scf.if %5 {
      %c0 = arith.constant 0 : index
      %c0_17 = arith.constant 0 : index
      %34 = vector.load %arg2[%c0, %c0_17] : memref<64x64xbf16, #tpu.memory_space<vmem>>, vector<64x64xbf16>
      %c0_18 = arith.constant 0 : index
      %c0_19 = arith.constant 0 : index
      %35 = vector.load %arg3[%c0_18, %c0_19] : memref<64x128xbf16, #tpu.memory_space<vmem>>, vector<64x128xbf16>
      %cst = arith.constant dense<0.000000e+00> : vector<64x128xf32>
      %36 = tpu.matmul %34, %35, %cst {dimension_numbers = #tpu.dot_dimension_numbers<[1], [0], [0], [1], [0, 0, 1, 1], [], []>} : vector<64x64xbf16>, vector<64x128xbf16>, vector<64x128xf32> -> vector<64x128xf32>
      %37 = arith.truncf %36 : vector<64x128xf32> to vector<64x128xbf16>
      %c0_20 = arith.constant 0 : index
      %c0_21 = arith.constant 0 : index
      %c0_22 = arith.constant 0 : index
      %38 = vector.load %arg4[%c0_20, %c0_21, %c0_22] : memref<1x128x128xbf16, #tpu.memory_space<vmem>>, vector<1x128x128xbf16>
      %39 = vector.shape_cast %38 : vector<1x128x128xbf16> to vector<128x128xbf16>
      %cst_23 = arith.constant dense<0.000000e+00> : vector<64x128xf32>
      %40 = tpu.matmul %37, %39, %cst_23 {dimension_numbers = #tpu.dot_dimension_numbers<[1], [0], [0], [1], [0, 0, 1, 1], [], []>} : vector<64x128xbf16>, vector<128x128xbf16>, vector<64x128xf32> -> vector<64x128xf32>
      %c0_24 = arith.constant 0 : index
      %c0_25 = arith.constant 0 : index
      %c0_26 = arith.constant 0 : index
      %41 = vector.load %arg5[%c0_24, %c0_25, %c0_26] : memref<1x1x128xf32, #tpu.memory_space<vmem>>, vector<1x1x128xf32>
      %42 = vector.shape_cast %41 : vector<1x1x128xf32> to vector<1x128xf32>
      %43 = vector.broadcast %42 : vector<1x128xf32> to vector<64x128xf32>
      %44 = arith.addf %40, %43 : vector<64x128xf32>
      %45 = arith.extui %2 : i1 to i32
      %c0_i32_27 = arith.constant 0 : i32
      %46 = arith.cmpi ne, %45, %c0_i32_27 : i32
      scf.if %46 {
        %cst_29 = arith.constant 0.000000e+00 : f32
        %50 = vector.broadcast %cst_29 : f32 to vector<64x128xf32>
        %51 = arith.maximumf %44, %50 : vector<64x128xf32>
        %52 = arith.truncf %51 : vector<64x128xf32> to vector<64x128xbf16>
        %53 = arith.index_cast %1 : i32 to index
        %c0_30 = arith.constant 0 : index
        %54 = vector.load %arg7[%53, %c0_30] : memref<64x128xbf16, #tpu.memory_space<vmem>>, vector<64x128xbf16>
        tpu.vector_store %arg7[%53, %c0_30], %52 {strides = array<i32>} : memref<64x128xbf16, #tpu.memory_space<vmem>>, vector<64x128xbf16>,
      } else {
      }
      %true = arith.constant true
      %47 = arith.xori %2, %true : i1
      %48 = arith.extui %47 : i1 to i32
      %c0_i32_28 = arith.constant 0 : i32
      %49 = arith.cmpi ne, %48, %c0_i32_28 : i32
      scf.if %49 {
        %c0_29 = arith.constant 0 : index
        %c0_30 = arith.constant 0 : index
        %50 = vector.load %arg6[%c0_29, %c0_30] : memref<64x128xf32, #tpu.memory_space<vmem>>, vector<64x128xf32>
        tpu.vector_store %arg6[%c0_29, %c0_30], %44 {strides = array<i32>} : memref<64x128xf32, #tpu.memory_space<vmem>>, vector<64x128xf32>,
      } else {
      }
    } else {
    }
    %c2_i32_1 = arith.constant 2 : i32
    %c0_i32_2 = arith.constant 0 : i32
    %6 = arith.cmpi eq, %c2_i32_1, %c0_i32_2 : i32
    %c1_i32 = arith.constant 1 : i32
    %7 = arith.select %6, %c1_i32, %c2_i32_1 : i32
    %8 = arith.remsi %arg0, %7 : i32
    %c0_i32_3 = arith.constant 0 : i32
    %9 = arith.cmpi ne, %8, %c0_i32_3 : i32
    %c0_i32_4 = arith.constant 0 : i32
    %10 = arith.cmpi slt, %8, %c0_i32_4 : i32
    %c0_i32_5 = arith.constant 0 : i32
    %11 = arith.cmpi slt, %7, %c0_i32_5 : i32
    %12 = arith.xori %10, %11 : i1
    %13 = arith.andi %12, %9 : i1
    %14 = arith.addi %8, %7 : i32
    %15 = arith.select %13, %14, %8 : i32
    %c1_i32_6 = arith.constant 1 : i32
    %16 = arith.cmpi eq, %15, %c1_i32_6 : i32
    %17 = arith.extui %16 : i1 to i32
    %c0_i32_7 = arith.constant 0 : i32
    %18 = arith.cmpi ne, %17, %c0_i32_7 : i32
    scf.if %18 {
      %c0 = arith.constant 0 : index
      %c0_17 = arith.constant 0 : index
      %34 = vector.load %arg2[%c0, %c0_17] : memref<64x64xbf16, #tpu.memory_space<vmem>>, vector<64x64xbf16>
      %c0_18 = arith.constant 0 : index
      %c0_19 = arith.constant 0 : index
      %35 = vector.load %arg7[%c0_18, %c0_19] : memref<64x128xbf16, #tpu.memory_space<vmem>>, vector<64x128xbf16>
      %cst = arith.constant dense<0.000000e+00> : vector<64x128xf32>
      %36 = tpu.matmul %34, %35, %cst {dimension_numbers = #tpu.dot_dimension_numbers<[1], [0], [0], [1], [0, 0, 1, 1], [], []>} : vector<64x64xbf16>, vector<64x128xbf16>, vector<64x128xf32> -> vector<64x128xf32>
      %37 = arith.truncf %36 : vector<64x128xf32> to vector<64x128xbf16>
      %c0_20 = arith.constant 0 : index
      %c0_21 = arith.constant 0 : index
      %c0_22 = arith.constant 0 : index
      %38 = vector.load %arg4[%c0_20, %c0_21, %c0_22] : memref<1x128x128xbf16, #tpu.memory_space<vmem>>, vector<1x128x128xbf16>
      %39 = vector.shape_cast %38 : vector<1x128x128xbf16> to vector<128x128xbf16>
      %cst_23 = arith.constant dense<0.000000e+00> : vector<64x128xf32>
      %40 = tpu.matmul %37, %39, %cst_23 {dimension_numbers = #tpu.dot_dimension_numbers<[1], [0], [0], [1], [0, 0, 1, 1], [], []>} : vector<64x128xbf16>, vector<128x128xbf16>, vector<64x128xf32> -> vector<64x128xf32>
      %c0_24 = arith.constant 0 : index
      %c0_25 = arith.constant 0 : index
      %c0_26 = arith.constant 0 : index
      %41 = vector.load %arg5[%c0_24, %c0_25, %c0_26] : memref<1x1x128xf32, #tpu.memory_space<vmem>>, vector<1x1x128xf32>
      %42 = vector.shape_cast %41 : vector<1x1x128xf32> to vector<1x128xf32>
      %43 = vector.broadcast %42 : vector<1x128xf32> to vector<64x128xf32>
      %44 = arith.addf %40, %43 : vector<64x128xf32>
      %45 = arith.extui %2 : i1 to i32
      %c0_i32_27 = arith.constant 0 : i32
      %46 = arith.cmpi ne, %45, %c0_i32_27 : i32
      scf.if %46 {
        %cst_29 = arith.constant 0.000000e+00 : f32
        %50 = vector.broadcast %cst_29 : f32 to vector<64x128xf32>
        %51 = arith.maximumf %44, %50 : vector<64x128xf32>
        %52 = arith.truncf %51 : vector<64x128xf32> to vector<64x128xbf16>
        %53 = arith.index_cast %1 : i32 to index
        %c0_30 = arith.constant 0 : index
        %54 = vector.load %arg8[%53, %c0_30] : memref<64x128xbf16, #tpu.memory_space<vmem>>, vector<64x128xbf16>
        tpu.vector_store %arg8[%53, %c0_30], %52 {strides = array<i32>} : memref<64x128xbf16, #tpu.memory_space<vmem>>, vector<64x128xbf16>,
      } else {
      }
      %true = arith.constant true
      %47 = arith.xori %2, %true : i1
      %48 = arith.extui %47 : i1 to i32
      %c0_i32_28 = arith.constant 0 : i32
      %49 = arith.cmpi ne, %48, %c0_i32_28 : i32
      scf.if %49 {
        %c0_29 = arith.constant 0 : index
        %c0_30 = arith.constant 0 : index
        %50 = vector.load %arg6[%c0_29, %c0_30] : memref<64x128xf32, #tpu.memory_space<vmem>>, vector<64x128xf32>
        tpu.vector_store %arg6[%c0_29, %c0_30], %44 {strides = array<i32>} : memref<64x128xf32, #tpu.memory_space<vmem>>, vector<64x128xf32>,
      } else {
      }
    } else {
    }
    %c0_i32_8 = arith.constant 0 : i32
    %19 = arith.cmpi sgt, %arg0, %c0_i32_8 : i32
    %c2_i32_9 = arith.constant 2 : i32
    %c0_i32_10 = arith.constant 0 : i32
    %20 = arith.cmpi eq, %c2_i32_9, %c0_i32_10 : i32
    %c1_i32_11 = arith.constant 1 : i32
    %21 = arith.select %20, %c1_i32_11, %c2_i32_9 : i32
    %22 = arith.remsi %arg0, %21 : i32
    %c0_i32_12 = arith.constant 0 : i32
    %23 = arith.cmpi ne, %22, %c0_i32_12 : i32
    %c0_i32_13 = arith.constant 0 : i32
    %24 = arith.cmpi slt, %22, %c0_i32_13 : i32
    %c0_i32_14 = arith.constant 0 : i32
    %25 = arith.cmpi slt, %21, %c0_i32_14 : i32
    %26 = arith.xori %24, %25 : i1
    %27 = arith.andi %26, %23 : i1
    %28 = arith.addi %22, %21 : i32
    %29 = arith.select %27, %28, %22 : i32
    %c0_i32_15 = arith.constant 0 : i32
    %30 = arith.cmpi eq, %29, %c0_i32_15 : i32
    %31 = arith.andi %19, %30 : i1
    %32 = arith.extui %31 : i1 to i32
    %c0_i32_16 = arith.constant 0 : i32
    %33 = arith.cmpi ne, %32, %c0_i32_16 : i32
    scf.if %33 {
      %c0 = arith.constant 0 : index
      %c0_17 = arith.constant 0 : index
      %34 = vector.load %arg2[%c0, %c0_17] : memref<64x64xbf16, #tpu.memory_space<vmem>>, vector<64x64xbf16>
      %c0_18 = arith.constant 0 : index
      %c0_19 = arith.constant 0 : index
      %35 = vector.load %arg8[%c0_18, %c0_19] : memref<64x128xbf16, #tpu.memory_space<vmem>>, vector<64x128xbf16>
      %cst = arith.constant dense<0.000000e+00> : vector<64x128xf32>
      %36 = tpu.matmul %34, %35, %cst {dimension_numbers = #tpu.dot_dimension_numbers<[1], [0], [0], [1], [0, 0, 1, 1], [], []>} : vector<64x64xbf16>, vector<64x128xbf16>, vector<64x128xf32> -> vector<64x128xf32>
      %37 = arith.truncf %36 : vector<64x128xf32> to vector<64x128xbf16>
      %c0_20 = arith.constant 0 : index
      %c0_21 = arith.constant 0 : index
      %c0_22 = arith.constant 0 : index
      %38 = vector.load %arg4[%c0_20, %c0_21, %c0_22] : memref<1x128x128xbf16, #tpu.memory_space<vmem>>, vector<1x128x128xbf16>
      %39 = vector.shape_cast %38 : vector<1x128x128xbf16> to vector<128x128xbf16>
      %cst_23 = arith.constant dense<0.000000e+00> : vector<64x128xf32>
      %40 = tpu.matmul %37, %39, %cst_23 {dimension_numbers = #tpu.dot_dimension_numbers<[1], [0], [0], [1], [0, 0, 1, 1], [], []>} : vector<64x128xbf16>, vector<128x128xbf16>, vector<64x128xf32> -> vector<64x128xf32>
      %c0_24 = arith.constant 0 : index
      %c0_25 = arith.constant 0 : index
      %c0_26 = arith.constant 0 : index
      %41 = vector.load %arg5[%c0_24, %c0_25, %c0_26] : memref<1x1x128xf32, #tpu.memory_space<vmem>>, vector<1x1x128xf32>
      %42 = vector.shape_cast %41 : vector<1x1x128xf32> to vector<1x128xf32>
      %43 = vector.broadcast %42 : vector<1x128xf32> to vector<64x128xf32>
      %44 = arith.addf %40, %43 : vector<64x128xf32>
      %45 = arith.extui %2 : i1 to i32
      %c0_i32_27 = arith.constant 0 : i32
      %46 = arith.cmpi ne, %45, %c0_i32_27 : i32
      scf.if %46 {
        %cst_29 = arith.constant 0.000000e+00 : f32
        %50 = vector.broadcast %cst_29 : f32 to vector<64x128xf32>
        %51 = arith.maximumf %44, %50 : vector<64x128xf32>
        %52 = arith.truncf %51 : vector<64x128xf32> to vector<64x128xbf16>
        %53 = arith.index_cast %1 : i32 to index
        %c0_30 = arith.constant 0 : index
        %54 = vector.load %arg7[%53, %c0_30] : memref<64x128xbf16, #tpu.memory_space<vmem>>, vector<64x128xbf16>
        tpu.vector_store %arg7[%53, %c0_30], %52 {strides = array<i32>} : memref<64x128xbf16, #tpu.memory_space<vmem>>, vector<64x128xbf16>,
      } else {
      }
      %true = arith.constant true
      %47 = arith.xori %2, %true : i1
      %48 = arith.extui %47 : i1 to i32
      %c0_i32_28 = arith.constant 0 : i32
      %49 = arith.cmpi ne, %48, %c0_i32_28 : i32
      scf.if %49 {
        %c0_29 = arith.constant 0 : index
        %c0_30 = arith.constant 0 : index
        %50 = vector.load %arg6[%c0_29, %c0_30] : memref<64x128xf32, #tpu.memory_space<vmem>>, vector<64x128xf32>
        tpu.vector_store %arg6[%c0_29, %c0_30], %44 {strides = array<i32>} : memref<64x128xf32, #tpu.memory_space<vmem>>, vector<64x128xf32>,
      } else {
      }
    } else {
    }
    return
  }
  func.func @transform_0(%arg0: i32, %arg1: i32) -> (i32, i32) {
    %c0_i32 = arith.constant 0 : i32
    %c0_i32_0 = arith.constant 0 : i32
    return %arg1, %c0_i32 : i32, i32
  }
  func.func @transform_1(%arg0: i32, %arg1: i32) -> (i32, i32) {
    %c0_i32 = arith.constant 0 : i32
    %c0_i32_0 = arith.constant 0 : i32
    %c0_i32_1 = arith.constant 0 : i32
    return %c0_i32, %c0_i32_0 : i32, i32
  }
  func.func @transform_2(%arg0: i32, %arg1: i32) -> (i32, i32, i32) {
    %c0_i32 = arith.constant 0 : i32
    %c0_i32_0 = arith.constant 0 : i32
    %c0_i32_1 = arith.constant 0 : i32
    return %arg0, %c0_i32, %c0_i32_0 : i32, i32, i32
  }
  func.func @transform_3(%arg0: i32, %arg1: i32) -> (i32, i32, i32) {
    %c0_i32 = arith.constant 0 : i32
    %c0_i32_0 = arith.constant 0 : i32
    %c0_i32_1 = arith.constant 0 : i32
    return %arg0, %c0_i32, %c0_i32_0 : i32, i32, i32
  }
  func.func @transform_4(%arg0: i32, %arg1: i32) -> (i32, i32) {
    %c0_i32 = arith.constant 0 : i32
    %c0_i32_0 = arith.constant 0 : i32
    return %arg1, %c0_i32 : i32, i32
  }
}

</mosaic_0001>

<bundles_post_ra>
// kernel: gin_forward.1
= control target key start
LH: loop header
LB: loop body
LE: loop exit
PB: predicated region body
PF: predicated region fallthrough
CT: control target
= control target key end

     0   :  { %s1622_s15 = smov 0   ;;  %s1624_s16 = smov 0   ;;  %s1842_s0 = inlined_call_operand.vmem [shape: bf16[64,64], index: 0, kind: input, shape index: {}]   ;;  %s1843_s1 = inlined_call_operand.vmem [shape: bf16[64,128], index: 1, kind: input, shape index: {}]   ;;  %s1844_s2 = inlined_call_operand.vmem [shape: bf16[3,128,128], index: 2, kind: input, shape index: {}]   ;;  %s1845_s3 = inlined_call_operand.vmem [shape: f32[3,1,128], index: 3, kind: input, shape index: {}]   ;;  %s1846_s4 = inlined_call_operand.vmem [shape: f32[64,128], index: 4, kind: output, shape index: {}]  }
   0x1   :  { %s1626_s17 = smov 0  }
   0x2 LB: > { %s26_s18 = sadd.s32 1, %s1591_s16  ;;  %p1255_p0 = scmp.ge.s32.totalorder %s1595_s17, 1  ;;  %s1595_s17 = sphi %s1626_s17, %s14_s17   ;;  %s1591_s16 = sphi %s1624_s16, %s1848_s16   ;;  %s1587_s15 = sphi %s1622_s15, %s1847_s15  }
   0x3   : > { %p28_p1 = scmp.ge.s32.totalorder %s26_s18, 3  ;;  %p193_p2 = scmp.lt.s32.totalorder %s1595_s17, 4 }
   0x5   : > { %s1850_s18 = smov (%p28_p1, %s26_s18), 0  ;;  %p194_p3 = pnand %p1255_p0, %p193_p2 }
   0x6   : > { %p233_p4 = scmp.lt.s32.totalorder (!%p194_p3), %s1587_s15, 2  ;;  %p1258_p5 = scmp.ne.s32.totalorder (!%p194_p3), %s1587_s15, 0 }
   0x7   : > { %197 = sbr.rel (%p194_p3) target bundleno = 1443 (0x5a3), region = 36 }
   0xe   : > { %s234_s19 = scalar_select %p233_p4, %s1587_s15, 2 }
   0xf   : > { %253 = sbr.rel (%p1258_p5) target bundleno = 487 (0x1e7), region = 40  ;;  %v1533_v0 = vld [vmem:[%s1843_s1] sm:$0xff] (!%p1258_p5)   ;;  %v1534_v1 = vld [vmem:[%s1843_s1 + $0x8] sm:$0xff] (!%p1258_p5)   ;;  %v1535_v2 = vld [vmem:[%s1843_s1 + $0x10] sm:$0xff] (!%p1258_p5)   ;;  %vm314_vm0 = vcmask (!%p1258_p5), 523264   ;;  %p1280_p6 = scmp.ge.s32.totalorder (!%p1258_p5), %s1587_s15, 2 }
  0x10   : > { %s1328_s20 = sshll.u32 %s234_s19, 6  ;;  %s1649_s23 = scalar_lea.vmem %s1845_s3, %s234_s19  ;;  %1389 = vmatprep.subr.bf16.mxu0 (!%p1258_p5), %v1533_v0  ;;  %v1537_v3 = vld [vmem:[%s1842_s0] sm:$0xff] (!%p1258_p5)   ;;  %v1536_v4 = vld [vmem:[%s1843_s1 + $0x18] sm:$0xff] (!%p1258_p5)   ;;  %v1538_v8 = vld [vmem:[%s1842_s0 + $0x8] sm:$0xff] (!%p1258_p5)  }
  0x11   : > { %s1654_s26 = scalar_lea.vmem %s1844_s2, %s1328_s20  ;;  %1390 = vmatpush3.bf16.msra.mxu0 (!%p1258_p5), %v1533_v0  ;;  %1397 = vmatprep.mubr.msk.bf16.mxu0 (!%p1258_p5), %vm314_vm0, %v1537_v3  ;;  %v1539_v9 = vld [vmem:[%s1842_s0 + $0x10] sm:$0xff] (!%p1258_p5)   ;;  %v1540_v12 = vld [vmem:[%s1842_s0 + $0x18] sm:$0xff] (!%p1258_p5)   ;;  %v1271_v28 = vld [vmem:[%s1649_s23] ss:$0 sm:$0xff] (!%p1258_p5) }
  0x12   : > { %1391 = vmatprep.subr.bf16.mxu0 (!%p1258_p5), %v1534_v1  ;;  %v1541_v5 = vld [vmem:[%s1654_s26] sm:$0xff] (!%p1258_p5)   ;;  %v1542_v6 = vld [vmem:[%s1654_s26 + $0x8] sm:$0xff] (!%p1258_p5)   ;;  %v1543_v7 = vld [vmem:[%s1654_s26 + $0x10] sm:$0xff] (!%p1258_p5)  }
  0x13   : > { %1405 = vmatprep.subr.bf16.mxu1 (!%p1258_p5), %v1541_v5  ;;  %v1544_v10 = vld [vmem:[%s1654_s26 + $0x18] sm:$0xff] (!%p1258_p5)   ;;  %v1545_v11 = vld [vmem:[%s1654_s26 + $0x20] sm:$0xff] (!%p1258_p5)   ;;  %v1546_v13 = vld [vmem:[%s1654_s26 + $0x28] sm:$0xff] (!%p1258_p5)  }
  0x14   : > { %1406 = vmatpush3.bf16.msra.mxu1 (!%p1258_p5), %v1541_v5  ;;  %v1547_v14 = vld [vmem:[%s1654_s26 + $0x30] sm:$0xff] (!%p1258_p5)   ;;  %v1548_v15 = vld [vmem:[%s1654_s26 + $0x38] sm:$0xff] (!%p1258_p5)  }
  0x15   : > { %1392 = vmatpush3.bf16.msra.mxu0 (!%p1258_p5), %v1534_v1  ;;  %1407 = vmatprep.subr.bf16.mxu1 (!%p1258_p5), %v1542_v6 }
  0x16   : > { %1393 = vmatprep.subr.bf16.mxu0 %v1535_v2 }
  0x18   : > { %1408 = vmatpush3.bf16.msra.mxu1 %v1542_v6 }
  0x19   : > { %1394 = vmatpush3.bf16.msra.mxu0 %v1535_v2  ;;  %1409 = vmatprep.subr.bf16.mxu1 %v1543_v7 }
  0x1a   : > { %1395 = vmatprep.subr.bf16.mxu0 %v1536_v4 }
  0x1c   : > { %1410 = vmatpush3.bf16.msra.mxu1 %v1543_v7 }
  0x1d   : > { %1396 = vmatpush3.bf16.msra.mxu0 %v1536_v4  ;;  %1411 = vmatprep.subr.bf16.mxu1 %v1544_v10 }
  0x20   : > { %1398 = vmatmul.mubr.msk.bf16.vlgmr.msra.gmra.mrb[0].mxu0 %vm314_vm0, %v1538_v8  ;;  %1412 = vmatpush3.bf16.msra.mxu1 %v1544_v10 }
  0x21   : > { %1401 = vmatprep.mubr.msk.bf16.mxu0 %vm314_vm0, %v1539_v9  ;;  %1413 = vmatprep.subr.bf16.mxu1 %v1545_v11 }
  0x24   : > { %1414 = vmatpush3.bf16.msra.mxu1 %v1545_v11 }
  0x25   : > { %1415 = vmatprep.subr.bf16.mxu1 %v1546_v13 }
  0x28   : > { %1402 = vmatmul.mubr.msk.bf16.gmra.mrb[4].mxu0 %vm314_vm0, %v1540_v12  ;;  %1416 = vmatpush3.bf16.msra.mxu1 %v1546_v13 }
  0x29   : > { %1417 = vmatprep.subr.bf16.mxu1 %v1547_v14 }
  0x2c   : > { %1418 = vmatpush3.bf16.msra.mxu1 %v1547_v14 }
  0x2d   : > { %1419 = vmatprep.subr.bf16.mxu1 %v1548_v15 }
  0x30   : > { %1420 = vmatpush3.bf16.msra.mxu1 %v1548_v15 }
  0xf3   : > { %v1399_v16 = vpop.f32.mrb[0].mxu0 }
  0xf4   : > { %v361_v17 = vpop.f32.mrb[1].mxu0 }
  0xf5   : > { %v1400_v18 = vpop.f32.mrb[2].mxu0 }
  0xf6   : > { %v393_v19 = vpack.c.bf16 %v1400_v18, %v1399_v16  ;;  %v364_v20 = vpop.f32.mrb[3].mxu0 }
  0xf7   : > { %v392_v21 = vpack.c.bf16 %v364_v20, %v361_v17 }
  0xf9   : > { %1421 = vmatprep.mubr.bf16.mxu1 %v392_v21 }
  0xfa   : > { %1422 = vmatmul.mubr.bf16.vlgmr.msra.gmra.mrb[0].mxu1 %v393_v19 }
  0xfb   : > { %v1403_v22 = vpop.f32.mrb[4].mxu0 }
  0xfc   : > { %v377_v23 = vpop.f32.mrb[5].mxu0 }
  0xfd   : > { %v1404_v24 = vpop.f32.mrb[6].mxu0 }
  0xfe   : > { %v395_v25 = vpack.c.bf16 %v1404_v24, %v1403_v22  ;;  %v380_v26 = vpop.f32.mrb[7].mxu0 }
  0xff   : > { %v394_v27 = vpack.c.bf16 %v380_v26, %v377_v23 }
 0x101   : > { %1425 = vmatprep.mubr.bf16.mxu1 %v394_v27 }
 0x102   : > { %1426 = vmatmul.mubr.bf16.gmra.mrb[4].mxu1 %v395_v25 }
 0x1cd   : > { %v1423_v29 = vpop.f32.mrb[0].mxu1 }
 0x1ce   : > { %v510_v30 = vadd.f32 %v1423_v29, %v1271_v28  ;;  %v501_v31 = vpop.f32.mrb[1].mxu1 }
 0x1cf   : > { %v502_v32 = vadd.f32 %v1271_v28, %v501_v31  ;;  %v1424_v33 = vpop.f32.mrb[2].mxu1 }
 0x1d0   : > { %v513_v34 = vadd.f32 %v1424_v33, %v1271_v28  ;;  %v504_v35 = vpop.f32.mrb[3].mxu1  ;;  %v537_v47 = vmax.f32 (!%p1280_p6), %v510_v30, 0.0 }
 0x1d1   : > { %v505_v36 = vadd.f32 %v1271_v28, %v504_v35  ;;  %v535_v45 = vmax.f32 (!%p1280_p6), %v502_v32, 0.0 }
 0x1d2   : > { %v538_v48 = vmax.f32 (!%p1280_p6), %v513_v34, 0.0 }
 0x1d3   : > { %534 = sbr.rel (%p1280_p6) target bundleno = 480 (0x1e0), region = 44  ;;  %v536_v46 = vmax.f32 (!%p1280_p6), %v505_v36, 0.0 }
 0x1d4   : > { %v544_v54 = vpack.c.bf16 (!%p1280_p6), %v538_v48, %v537_v47 }
 0x1d5   : > { %v1427_v37 = vpop.f32.mrb[4].mxu1  ;;  %v543_v53 = vpack.c.bf16 (!%p1280_p6), %v536_v46, %v535_v45 }
 0x1d6   : > { %v526_v38 = vadd.f32 %v1427_v37, %v1271_v28  ;;  %v517_v39 = vpop.f32.mrb[5].mxu1  ;;  %552 = vst [vmem:[#allocation2 + $0x8] sm:$0xff] (!%p1280_p6), %v544_v54 }
 0x1d7   : > { %v518_v40 = vadd.f32 %v1271_v28, %v517_v39  ;;  %v1428_v41 = vpop.f32.mrb[6].mxu1  ;;  %551 = vst [vmem:[#allocation2] sm:$0xff] (!%p1280_p6), %v543_v53 }
 0x1d8   : > { %v529_v42 = vadd.f32 %v1428_v41, %v1271_v28  ;;  %v520_v43 = vpop.f32.mrb[7].mxu1  ;;  %v541_v51 = vmax.f32 (!%p1280_p6), %v526_v38, 0.0 }
 0x1d9   : > { %v521_v44 = vadd.f32 %v1271_v28, %v520_v43  ;;  %v539_v49 = vmax.f32 (!%p1280_p6), %v518_v40, 0.0 }
 0x1da   : > { %v542_v52 = vmax.f32 %v529_v42, 0.0 }
 0x1db   : > { %v540_v50 = vmax.f32 %v521_v44, 0.0 }
 0x1dc   : > { %v546_v56 = vpack.c.bf16 %v542_v52, %v541_v51 }
 0x1dd   : > { %v545_v55 = vpack.c.bf16 %v540_v50, %v539_v49 }
 0x1de   : > { %554 = vst [vmem:[#allocation2 + $0x18] sm:$0xff] %v546_v56 }
 0x1df   : > { %553 = vst [vmem:[#allocation2 + $0x10] sm:$0xff] %v545_v55 }
 0x1e0 PF: > { %558 = sbr.rel (%p233_p4) target bundleno = 487 (0x1e7), region = 48  ;;  %559 = vst [vmem:[%s1846_s4] sm:$0xff] (!%p233_p4), %v502_v32  ;;  %560 = vst [vmem:[%s1846_s4 + $0x8] sm:$0xff] (!%p233_p4), %v505_v36 }
 0x1e1   : > { %561 = vst [vmem:[%s1846_s4 + $0x10] sm:$0xff] (!%p233_p4), %v510_v30  ;;  %562 = vst [vmem:[%s1846_s4 + $0x18] sm:$0xff] (!%p233_p4), %v513_v34 }
 0x1e2   : > { %563 = vst [vmem:[%s1846_s4 + $0x20] sm:$0xff] (!%p233_p4), %v518_v40  ;;  %564 = vst [vmem:[%s1846_s4 + $0x28] sm:$0xff] (!%p233_p4), %v521_v44 }
 0x1e3   : > { %565 = vst [vmem:[%s1846_s4 + $0x30] sm:$0xff] (!%p233_p4), %v526_v38  ;;  %566 = vst [vmem:[%s1846_s4 + $0x38] sm:$0xff] (!%p233_p4), %v529_v42 }
 0x1e7 PF: > { %p567_p7 = scmp.lt.s32.totalorder %s1587_s15, 0  ;;  %s568_s13 = ssub.s32 0, %s1587_s15 }
 0x1e8   : > { %s1282_s14 = smin.u32 %s1587_s15, %s568_s13 }
 0x1e9   : > { %s570_s19 = sand.u32 1, %s1282_s14  }
 0x1ea   : > { %s571_s20 = ssub.s32 0, %s570_s19 }
 0x1eb   : > { %s1852_s20 = smov (!%p567_p7, %s571_s20), %s570_s19 }
 0x1ec   : > { %p1284_p8 = scmp.lt.s32.totalorder %s1852_s20, 0  ;;  %s577_s21 = sadd.s32 2, %s1852_s20 }
 0x1ee   : > { %s1854_s21 = smov (!%p1284_p8, %s577_s21), %s1852_s20 }
 0x1ef   : > { %p1285_p9 = scmp.ne.s32.totalorder %s1854_s21, 1 }
 0x1f0   : > { %v591_v57 = vld [vmem:[#allocation2] sm:$0xff] (!%p1285_p9)  ;;  %v592_v58 = vld [vmem:[#allocation2 + $0x8] sm:$0xff] (!%p1285_p9)  ;;  %vm615_vm1 = vcmask (!%p1285_p9), 523264   ;;  %v593_v60 = vld [vmem:[#allocation2 + $0x10] sm:$0xff] (!%p1285_p9)  ;;  %p1303_p10 = scmp.ge.s32.totalorder (!%p1285_p9), %s1587_s15, 2 }
 0x1f1   : > { %582 = sbr.rel (%p1285_p9) target bundleno = 968 (0x3c8), region = 52  ;;  %1429 = vmatprep.subr.bf16.mxu0 (!%p1285_p9), %v591_v57  ;;  %v1549_v59 = vld [vmem:[%s1842_s0] sm:$0xff] (!%p1285_p9)   ;;  %v1554_v62 = vld [vmem:[%s1654_s26 + $0x8] sm:$0xff] (!%p1285_p9)   ;;  %v594_v63 = vld [vmem:[#allocation2 + $0x18] sm:$0xff] (!%p1285_p9) }
 0x1f2   : > { %1430 = vmatpush3.bf16.msra.mxu0 (!%p1285_p9), %v591_v57  ;;  %1437 = vmatprep.mubr.msk.bf16.mxu0 (!%p1285_p9), %vm615_vm1, %v1549_v59  ;;  %v1553_v61 = vld [vmem:[%s1654_s26] sm:$0xff] (!%p1285_p9)   ;;  %v1555_v0 = vld [vmem:[%s1654_s26 + $0x10] sm:$0xff] (!%p1285_p9)   ;;  %v1550_v1 = vld [vmem:[%s1842_s0 + $0x8] sm:$0xff] (!%p1285_p9)  }
 0x1f3   : > { %1431 = vmatprep.subr.bf16.mxu0 (!%p1285_p9), %v592_v58  ;;  %1445 = vmatprep.subr.bf16.mxu1 (!%p1285_p9), %v1553_v61  ;;  %v1551_v2 = vld [vmem:[%s1842_s0 + $0x10] sm:$0xff] (!%p1285_p9)   ;;  %v1556_v3 = vld [vmem:[%s1654_s26 + $0x18] sm:$0xff] (!%p1285_p9)   ;;  %v1557_v4 = vld [vmem:[%s1654_s26 + $0x20] sm:$0xff] (!%p1285_p9)  }
 0x1f4   : > { %1446 = vmatpush3.bf16.msra.mxu1 (!%p1285_p9), %v1553_v61  ;;  %v1552_v5 = vld [vmem:[%s1842_s0 + $0x18] sm:$0xff] (!%p1285_p9)   ;;  %v1558_v6 = vld [vmem:[%s1654_s26 + $0x28] sm:$0xff] (!%p1285_p9)   ;;  %v1559_v7 = vld [vmem:[%s1654_s26 + $0x30] sm:$0xff] (!%p1285_p9)  }
 0x1f5   : > { %1447 = vmatprep.subr.bf16.mxu1 (!%p1285_p9), %v1554_v62  ;;  %v1560_v8 = vld [vmem:[%s1654_s26 + $0x38] sm:$0xff] (!%p1285_p9)   ;;  %v1294_v21 = vld [vmem:[%s1649_s23] ss:$0 sm:$0xff] (!%p1285_p9) }
 0x1f6   : > { %1432 = vmatpush3.bf16.msra.mxu0 (!%p1285_p9), %v592_v58 }
 0x1f7   : > { %1433 = vmatprep.subr.bf16.mxu0 (!%p1285_p9), %v593_v60 }
 0x1f8   : > { %1448 = vmatpush3.bf16.msra.mxu1 %v1554_v62 }
 0x1f9   : > { %1449 = vmatprep.subr.bf16.mxu1 %v1555_v0 }
 0x1fa   : > { %1434 = vmatpush3.bf16.msra.mxu0 %v593_v60 }
 0x1fb   : > { %1435 = vmatprep.subr.bf16.mxu0 %v594_v63 }
 0x1fc   : > { %1450 = vmatpush3.bf16.msra.mxu1 %v1555_v0 }
 0x1fd   : > { %1451 = vmatprep.subr.bf16.mxu1 %v1556_v3 }
 0x1fe   : > { %1436 = vmatpush3.bf16.msra.mxu0 %v594_v63 }
 0x200   : > { %1452 = vmatpush3.bf16.msra.mxu1 %v1556_v3 }
 0x201   : > { %1438 = vmatmul.mubr.msk.bf16.vlgmr.msra.gmra.mrb[0].mxu0 %vm615_vm1, %v1550_v1  ;;  %1453 = vmatprep.subr.bf16.mxu1 %v1557_v4 }
 0x202   : > { %1441 = vmatprep.mubr.msk.bf16.mxu0 %vm615_vm1, %v1551_v2 }
 0x204   : > { %1454 = vmatpush3.bf16.msra.mxu1 %v1557_v4 }
 0x205   : > { %1455 = vmatprep.subr.bf16.mxu1 %v1558_v6 }
 0x208   : > { %1456 = vmatpush3.bf16.msra.mxu1 %v1558_v6 }
 0x209   : > { %1442 = vmatmul.mubr.msk.bf16.gmra.mrb[4].mxu0 %vm615_vm1, %v1552_v5  ;;  %1457 = vmatprep.subr.bf16.mxu1 %v1559_v7 }
 0x20c   : > { %1458 = vmatpush3.bf16.msra.mxu1 %v1559_v7 }
 0x20d   : > { %1459 = vmatprep.subr.bf16.mxu1 %v1560_v8 }
 0x210   : > { %1460 = vmatpush3.bf16.msra.mxu1 %v1560_v8 }
 0x2d4   : > { %v1439_v9 = vpop.f32.mrb[0].mxu0 }
 0x2d5   : > { %v662_v10 = vpop.f32.mrb[1].mxu0 }
 0x2d6   : > { %v1440_v11 = vpop.f32.mrb[2].mxu0 }
 0x2d7   : > { %v694_v12 = vpack.c.bf16 %v1440_v11, %v1439_v9  ;;  %v665_v13 = vpop.f32.mrb[3].mxu0 }
 0x2d8   : > { %v693_v14 = vpack.c.bf16 %v665_v13, %v662_v10 }
 0x2da   : > { %1461 = vmatprep.mubr.bf16.mxu1 %v693_v14 }
 0x2db   : > { %1462 = vmatmul.mubr.bf16.vlgmr.msra.gmra.mrb[0].mxu1 %v694_v12 }
 0x2dc   : > { %v1443_v15 = vpop.f32.mrb[4].mxu0 }
 0x2dd   : > { %v678_v16 = vpop.f32.mrb[5].mxu0 }
 0x2de   : > { %v1444_v17 = vpop.f32.mrb[6].mxu0 }
 0x2df   : > { %v696_v18 = vpack.c.bf16 %v1444_v17, %v1443_v15  ;;  %v681_v19 = vpop.f32.mrb[7].mxu0 }
 0x2e0   : > { %v695_v20 = vpack.c.bf16 %v681_v19, %v678_v16 }
 0x2e2   : > { %1465 = vmatprep.mubr.bf16.mxu1 %v695_v20 }
 0x2e3   : > { %1466 = vmatmul.mubr.bf16.gmra.mrb[4].mxu1 %v696_v18 }
 0x3ae   : > { %v1463_v22 = vpop.f32.mrb[0].mxu1 }
 0x3af   : > { %v811_v23 = vadd.f32 %v1463_v22, %v1294_v21  ;;  %v802_v24 = vpop.f32.mrb[1].mxu1 }
 0x3b0   : > { %v803_v25 = vadd.f32 %v1294_v21, %v802_v24  ;;  %v1464_v26 = vpop.f32.mrb[2].mxu1 }
 0x3b1   : > { %v814_v27 = vadd.f32 %v1464_v26, %v1294_v21  ;;  %v805_v28 = vpop.f32.mrb[3].mxu1  ;;  %v838_v40 = vmax.f32 (!%p1303_p10), %v811_v23, 0.0 }
 0x3b2   : > { %v806_v29 = vadd.f32 %v1294_v21, %v805_v28  ;;  %v836_v38 = vmax.f32 (!%p1303_p10), %v803_v25, 0.0 }
 0x3b3   : > { %v839_v41 = vmax.f32 (!%p1303_p10), %v814_v27, 0.0 }
 0x3b4   : > { %835 = sbr.rel (%p1303_p10) target bundleno = 961 (0x3c1), region = 56  ;;  %v837_v39 = vmax.f32 (!%p1303_p10), %v806_v29, 0.0 }
 0x3b5   : > { %v845_v47 = vpack.c.bf16 (!%p1303_p10), %v839_v41, %v838_v40 }
 0x3b6   : > { %v1467_v30 = vpop.f32.mrb[4].mxu1  ;;  %v844_v46 = vpack.c.bf16 (!%p1303_p10), %v837_v39, %v836_v38 }
 0x3b7   : > { %v827_v31 = vadd.f32 %v1467_v30, %v1294_v21  ;;  %v818_v32 = vpop.f32.mrb[5].mxu1  ;;  %853 = vst [vmem:[#allocation3 + $0x8] sm:$0xff] (!%p1303_p10), %v845_v47 }
 0x3b8   : > { %v819_v33 = vadd.f32 %v1294_v21, %v818_v32  ;;  %v1468_v34 = vpop.f32.mrb[6].mxu1  ;;  %852 = vst [vmem:[#allocation3] sm:$0xff] (!%p1303_p10), %v844_v46 }
 0x3b9   : > { %v830_v35 = vadd.f32 %v1468_v34, %v1294_v21  ;;  %v821_v36 = vpop.f32.mrb[7].mxu1  ;;  %v842_v44 = vmax.f32 (!%p1303_p10), %v827_v31, 0.0 }
 0x3ba   : > { %v822_v37 = vadd.f32 %v1294_v21, %v821_v36  ;;  %v840_v42 = vmax.f32 (!%p1303_p10), %v819_v33, 0.0 }
 0x3bb   : > { %v843_v45 = vmax.f32 %v830_v35, 0.0 }
 0x3bc   : > { %v841_v43 = vmax.f32 %v822_v37, 0.0 }
 0x3bd   : > { %v847_v49 = vpack.c.bf16 %v843_v45, %v842_v44 }
 0x3be   : > { %v846_v48 = vpack.c.bf16 %v841_v43, %v840_v42 }
 0x3bf   : > { %855 = vst [vmem:[#allocation3 + $0x18] sm:$0xff] %v847_v49 }
 0x3c0   : > { %854 = vst [vmem:[#allocation3 + $0x10] sm:$0xff] %v846_v48 }
 0x3c1 PF: > { %859 = sbr.rel (%p233_p4) target bundleno = 968 (0x3c8), region = 60  ;;  %860 = vst [vmem:[%s1846_s4] sm:$0xff] (!%p233_p4), %v803_v25  ;;  %861 = vst [vmem:[%s1846_s4 + $0x8] sm:$0xff] (!%p233_p4), %v806_v29 }
 0x3c2   : > { %862 = vst [vmem:[%s1846_s4 + $0x10] sm:$0xff] (!%p233_p4), %v811_v23  ;;  %863 = vst [vmem:[%s1846_s4 + $0x18] sm:$0xff] (!%p233_p4), %v814_v27 }
 0x3c3   : > { %864 = vst [vmem:[%s1846_s4 + $0x20] sm:$0xff] (!%p233_p4), %v819_v33  ;;  %865 = vst [vmem:[%s1846_s4 + $0x28] sm:$0xff] (!%p233_p4), %v822_v37 }
 0x3c4   : > { %866 = vst [vmem:[%s1846_s4 + $0x30] sm:$0xff] (!%p233_p4), %v827_v31  ;;  %867 = vst [vmem:[%s1846_s4 + $0x38] sm:$0xff] (!%p233_p4), %v830_v35 }
 0x3c8 PF: > { %p868_p11 = scmp.gt.s32.totalorder %s1587_s15, 0  ;;  %p869_p12 = scmp.eq.s32.totalorder %s1854_s21, 0 }
 0x3ca   : > { %p870_p13 = pnand %p869_p12, %p868_p11 }
 0x3cb   : > { %v882_v50 = vld [vmem:[#allocation3] sm:$0xff] (!%p870_p13)  ;;  %v883_v51 = vld [vmem:[#allocation3 + $0x8] sm:$0xff] (!%p870_p13)  ;;  %vm906_vm2 = vcmask (!%p870_p13), 523264   ;;  %v884_v53 = vld [vmem:[#allocation3 + $0x10] sm:$0xff] (!%p870_p13)  ;;  %p1322_p0 = scmp.ge.s32.totalorder (!%p870_p13), %s1587_s15, 2 }
 0x3cc   : > { %873 = sbr.rel (%p870_p13) target bundleno = 1443 (0x5a3), region = 64  ;;  %1469 = vmatprep.subr.bf16.mxu0 (!%p870_p13), %v882_v50  ;;  %v1561_v52 = vld [vmem:[%s1842_s0] sm:$0xff] (!%p870_p13)   ;;  %v1566_v55 = vld [vmem:[%s1654_s26 + $0x8] sm:$0xff] (!%p870_p13)   ;;  %v885_v56 = vld [vmem:[#allocation3 + $0x18] sm:$0xff] (!%p870_p13) }
 0x3cd   : > { %1470 = vmatpush3.bf16.msra.mxu0 (!%p870_p13), %v882_v50  ;;  %1477 = vmatprep.mubr.msk.bf16.mxu0 (!%p870_p13), %vm906_vm2, %v1561_v52  ;;  %v1565_v54 = vld [vmem:[%s1654_s26] sm:$0xff] (!%p870_p13)   ;;  %v1567_v57 = vld [vmem:[%s1654_s26 + $0x10] sm:$0xff] (!%p870_p13)   ;;  %v1562_v58 = vld [vmem:[%s1842_s0 + $0x8] sm:$0xff] (!%p870_p13)  }
 0x3ce   : > { %1471 = vmatprep.subr.bf16.mxu0 (!%p870_p13), %v883_v51  ;;  %1485 = vmatprep.subr.bf16.mxu1 (!%p870_p13), %v1565_v54  ;;  %v1563_v59 = vld [vmem:[%s1842_s0 + $0x10] sm:$0xff] (!%p870_p13)   ;;  %v1568_v60 = vld [vmem:[%s1654_s26 + $0x18] sm:$0xff] (!%p870_p13)   ;;  %v1569_v61 = vld [vmem:[%s1654_s26 + $0x20] sm:$0xff] (!%p870_p13)  }
 0x3cf   : > { %1486 = vmatpush3.bf16.msra.mxu1 (!%p870_p13), %v1565_v54  ;;  %v1564_v62 = vld [vmem:[%s1842_s0 + $0x18] sm:$0xff] (!%p870_p13)   ;;  %v1570_v63 = vld [vmem:[%s1654_s26 + $0x28] sm:$0xff] (!%p870_p13)   ;;  %v1571_v0 = vld [vmem:[%s1654_s26 + $0x30] sm:$0xff] (!%p870_p13)  }
 0x3d0   : > { %1487 = vmatprep.subr.bf16.mxu1 (!%p870_p13), %v1566_v55  ;;  %v1572_v1 = vld [vmem:[%s1654_s26 + $0x38] sm:$0xff] (!%p870_p13)   ;;  %v1313_v14 = vld [vmem:[%s1649_s23] ss:$0 sm:$0xff] (!%p870_p13) }
 0x3d1   : > { %1472 = vmatpush3.bf16.msra.mxu0 (!%p870_p13), %v883_v51 }
 0x3d2   : > { %1473 = vmatprep.subr.bf16.mxu0 (!%p870_p13), %v884_v53 }
 0x3d3   : > { %1488 = vmatpush3.bf16.msra.mxu1 %v1566_v55 }
 0x3d4   : > { %1489 = vmatprep.subr.bf16.mxu1 %v1567_v57 }
 0x3d5   : > { %1474 = vmatpush3.bf16.msra.mxu0 %v884_v53 }
 0x3d6   : > { %1475 = vmatprep.subr.bf16.mxu0 %v885_v56 }
 0x3d7   : > { %1490 = vmatpush3.bf16.msra.mxu1 %v1567_v57 }
 0x3d8   : > { %1491 = vmatprep.subr.bf16.mxu1 %v1568_v60 }
 0x3d9   : > { %1476 = vmatpush3.bf16.msra.mxu0 %v885_v56 }
 0x3db   : > { %1492 = vmatpush3.bf16.msra.mxu1 %v1568_v60 }
 0x3dc   : > { %1478 = vmatmul.mubr.msk.bf16.vlgmr.msra.gmra.mrb[0].mxu0 %vm906_vm2, %v1562_v58  ;;  %1493 = vmatprep.subr.bf16.mxu1 %v1569_v61 }
 0x3dd   : > { %1481 = vmatprep.mubr.msk.bf16.mxu0 %vm906_vm2, %v1563_v59 }
 0x3df   : > { %1494 = vmatpush3.bf16.msra.mxu1 %v1569_v61 }
 0x3e0   : > { %1495 = vmatprep.subr.bf16.mxu1 %v1570_v63 }
 0x3e3   : > { %1496 = vmatpush3.bf16.msra.mxu1 %v1570_v63 }
 0x3e4   : > { %1482 = vmatmul.mubr.msk.bf16.gmra.mrb[4].mxu0 %vm906_vm2, %v1564_v62  ;;  %1497 = vmatprep.subr.bf16.mxu1 %v1571_v0 }
 0x3e7   : > { %1498 = vmatpush3.bf16.msra.mxu1 %v1571_v0 }
 0x3e8   : > { %1499 = vmatprep.subr.bf16.mxu1 %v1572_v1 }
 0x3eb   : > { %1500 = vmatpush3.bf16.msra.mxu1 %v1572_v1 }
 0x4af   : > { %v1479_v2 = vpop.f32.mrb[0].mxu0 }
 0x4b0   : > { %v953_v3 = vpop.f32.mrb[1].mxu0 }
 0x4b1   : > { %v1480_v4 = vpop.f32.mrb[2].mxu0 }
 0x4b2   : > { %v985_v5 = vpack.c.bf16 %v1480_v4, %v1479_v2  ;;  %v956_v6 = vpop.f32.mrb[3].mxu0 }
 0x4b3   : > { %v984_v7 = vpack.c.bf16 %v956_v6, %v953_v3 }
 0x4b5   : > { %1501 = vmatprep.mubr.bf16.mxu1 %v984_v7 }
 0x4b6   : > { %1502 = vmatmul.mubr.bf16.vlgmr.msra.gmra.mrb[0].mxu1 %v985_v5 }
 0x4b7   : > { %v1483_v8 = vpop.f32.mrb[4].mxu0 }
 0x4b8   : > { %v969_v9 = vpop.f32.mrb[5].mxu0 }
 0x4b9   : > { %v1484_v10 = vpop.f32.mrb[6].mxu0 }
 0x4ba   : > { %v987_v11 = vpack.c.bf16 %v1484_v10, %v1483_v8  ;;  %v972_v12 = vpop.f32.mrb[7].mxu0 }
 0x4bb   : > { %v986_v13 = vpack.c.bf16 %v972_v12, %v969_v9 }
 0x4bd   : > { %1505 = vmatprep.mubr.bf16.mxu1 %v986_v13 }
 0x4be   : > { %1506 = vmatmul.mubr.bf16.gmra.mrb[4].mxu1 %v987_v11 }
 0x589   : > { %v1503_v15 = vpop.f32.mrb[0].mxu1 }
 0x58a   : > { %v1102_v16 = vadd.f32 %v1503_v15, %v1313_v14  ;;  %v1093_v17 = vpop.f32.mrb[1].mxu1 }
 0x58b   : > { %v1094_v18 = vadd.f32 %v1313_v14, %v1093_v17  ;;  %v1504_v19 = vpop.f32.mrb[2].mxu1 }
 0x58c   : > { %v1105_v20 = vadd.f32 %v1504_v19, %v1313_v14  ;;  %v1096_v21 = vpop.f32.mrb[3].mxu1  ;;  %v1129_v33 = vmax.f32 (!%p1322_p0), %v1102_v16, 0.0 }
 0x58d   : > { %v1097_v22 = vadd.f32 %v1313_v14, %v1096_v21  ;;  %v1127_v31 = vmax.f32 (!%p1322_p0), %v1094_v18, 0.0 }
 0x58e   : > { %v1130_v34 = vmax.f32 (!%p1322_p0), %v1105_v20, 0.0 }
 0x58f   : > { %1126 = sbr.rel (%p1322_p0) target bundleno = 1436 (0x59c), region = 68  ;;  %v1128_v32 = vmax.f32 (!%p1322_p0), %v1097_v22, 0.0 }
 0x590   : > { %v1136_v40 = vpack.c.bf16 (!%p1322_p0), %v1130_v34, %v1129_v33 }
 0x591   : > { %v1507_v23 = vpop.f32.mrb[4].mxu1  ;;  %v1135_v39 = vpack.c.bf16 (!%p1322_p0), %v1128_v32, %v1127_v31 }
 0x592   : > { %v1118_v24 = vadd.f32 %v1507_v23, %v1313_v14  ;;  %v1109_v25 = vpop.f32.mrb[5].mxu1  ;;  %1144 = vst [vmem:[#allocation2 + $0x8] sm:$0xff] (!%p1322_p0), %v1136_v40 }
 0x593   : > { %v1110_v26 = vadd.f32 %v1313_v14, %v1109_v25  ;;  %v1508_v27 = vpop.f32.mrb[6].mxu1  ;;  %1143 = vst [vmem:[#allocation2] sm:$0xff] (!%p1322_p0), %v1135_v39 }
 0x594   : > { %v1121_v28 = vadd.f32 %v1508_v27, %v1313_v14  ;;  %v1112_v29 = vpop.f32.mrb[7].mxu1  ;;  %v1133_v37 = vmax.f32 (!%p1322_p0), %v1118_v24, 0.0 }
 0x595   : > { %v1113_v30 = vadd.f32 %v1313_v14, %v1112_v29  ;;  %v1131_v35 = vmax.f32 (!%p1322_p0), %v1110_v26, 0.0 }
 0x596   : > { %v1134_v38 = vmax.f32 %v1121_v28, 0.0 }
 0x597   : > { %v1132_v36 = vmax.f32 %v1113_v30, 0.0 }
 0x598   : > { %v1138_v42 = vpack.c.bf16 %v1134_v38, %v1133_v37 }
 0x599   : > { %v1137_v41 = vpack.c.bf16 %v1132_v36, %v1131_v35 }
 0x59a   : > { %1146 = vst [vmem:[#allocation2 + $0x18] sm:$0xff] %v1138_v42 }
 0x59b   : > { %1145 = vst [vmem:[#allocation2 + $0x10] sm:$0xff] %v1137_v41 }
 0x59c PF: > { %1150 = sbr.rel (%p233_p4) target bundleno = 1443 (0x5a3), region = 72  ;;  %1151 = vst [vmem:[%s1846_s4] sm:$0xff] (!%p233_p4), %v1094_v18  ;;  %1152 = vst [vmem:[%s1846_s4 + $0x8] sm:$0xff] (!%p233_p4), %v1097_v22 }
 0x59d   : > { %1153 = vst [vmem:[%s1846_s4 + $0x10] sm:$0xff] (!%p233_p4), %v1102_v16  ;;  %1154 = vst [vmem:[%s1846_s4 + $0x18] sm:$0xff] (!%p233_p4), %v1105_v20 }
 0x59e   : > { %1155 = vst [vmem:[%s1846_s4 + $0x20] sm:$0xff] (!%p233_p4), %v1110_v26  ;;  %1156 = vst [vmem:[%s1846_s4 + $0x28] sm:$0xff] (!%p233_p4), %v1113_v30 }
 0x59f   : > { %1157 = vst [vmem:[%s1846_s4 + $0x30] sm:$0xff] (!%p233_p4), %v1118_v24  ;;  %1158 = vst [vmem:[%s1846_s4 + $0x38] sm:$0xff] (!%p233_p4), %v1121_v28 }
 0x5a3 PF: > { %s14_s17 = sadd.s32 1, %s1595_s17   ;;  %s1847_s15 = smov %s1591_s16 }
 0x5a4   : > { %p11_p1 = scmp.ge.s32.totalorder %s14_s17, 5   ;;  %s1848_s16 = smov %s1850_s18 }
 0x5a6   :  { %13 = sbr.rel (!%p11_p1) target bundleno = 2 (0x2), region = 111 }

</bundles_post_ra>
